<compile_context>
chip_gen: v7x
topology: tpu7x:2x2x1
jax: 0.10.0
libtpu: 0.0.40
codegen_flags: <defaults>
</compile_context>

<pallas_src>
import math

import jax
import jax.numpy as jnp
from jax.experimental import pallas as pl
from jax.experimental.pallas import tpu as pltpu


_LANE = 128
_VMEM_TILE_BUDGET = 24 * 1024 * 1024   # target working set (double-buffered tiles)
_VMEM_LIMIT_BYTES = 48 * 1024 * 1024   # scoped-VMEM limit (safe on v5e/v6e/v7x)


def _round_up(x: int, m: int) -> int:
    return ((x + m - 1) // m) * m


def _sublane(dtype) -> int:
    """Native sublane packing: f32 -> 8 rows, bf16 -> 16, int8/fp8 -> 32."""
    bits = jnp.dtype(dtype).itemsize * 8
    return max(8, 256 // bits)


def _choose_tile(dim: int, base: int, max_tile: int):
    """Pick a tile (multiple of `base`, <= max_tile) minimizing padding of `dim`.

    Returns (tile, padded_dim)."""
    dim_r = _round_up(max(dim, 1), base)
    max_tile = max(base, (min(max_tile, dim_r) // base) * base)
    best = None
    for t in range(base, max_tile + 1, base):
        cand = (_round_up(dim_r, t), -t)           # minimize padding, then maximize tile
        if best is None or cand < best:
            best = cand
    return -best[1], best[0]


def _mlp_silu_kernel_single_k(x_ref, w_ref, b_ref, o_ref):
    """Whole reduction in one block: no accumulator, no K grid axis."""
    y = jnp.dot(x_ref[...], w_ref[...], preferred_element_type=jnp.float32)
    y = y + b_ref[...]
    o_ref[...] = (y * jax.nn.sigmoid(y)).astype(o_ref.dtype)


def _mlp_silu_kernel_multi_k(x_ref, w_ref, b_ref, o_ref, acc_ref):
    """K streamed along grid axis 2; f32 accumulator; bias+SiLU in the epilogue."""
    k = pl.program_id(2)

    @pl.when(k == 0)
    def _():
        acc_ref[...] = jnp.zeros_like(acc_ref)

    acc_ref[...] += jnp.dot(x_ref[...], w_ref[...], preferred_element_type=jnp.float32)

    @pl.when(k == pl.num_programs(2) - 1)
    def _():
        y = acc_ref[...] + b_ref[...]
        o_ref[...] = (y * jax.nn.sigmoid(y)).astype(o_ref.dtype)


def mlp_layer(x, w, b, *, compute_dtype=jnp.bfloat16, out_dtype=None,
              tm_max=512, tn_max=512):
    """Linear(Cin -> Cout) + SiLU.  x:(N,Cin), w:(Cin,Cout), b:(Cout,) -> (N,Cout)."""
    n, cin = x.shape
    cin_w, cout = w.shape
    assert cin_w == cin, "weight must be (Cin, Cout)"
    out_dtype = out_dtype or x.dtype
    compute_dtype = compute_dtype or x.dtype
    in_bytes = jnp.dtype(compute_dtype).itemsize
    out_bytes = jnp.dtype(out_dtype).itemsize

    # ---- Tile selection (minimal padding, dtype-aware sublane rounding). ----
    sub = _sublane(compute_dtype)
    tm, mp = _choose_tile(n, sub, tm_max)
    tn, np_ = _choose_tile(cout, _LANE, tn_max)

    # v7x megacore: guarantee >=2 tiles on at least one parallel axis when possible.
    if mp // tm == 1 and np_ // tn == 1:
        if mp >= np_ and mp >= 2 * sub:
            tm, mp = _choose_tile(n, sub, tm // 2)
        elif np_ >= 2 * _LANE:
            tn, np_ = _choose_tile(cout, _LANE, tn // 2)

    # K tile: stream the whole reduction in a single block if it fits the budget.
    fixed = (tm * tn * 4                       # f32 accumulator (worst case)
             + 2 * tm * tn * out_bytes         # double-buffered output tile
             + 2 * tn * 4)                     # bias tile
    per_k_unit = 2 * (tm + tn) * _LANE * in_bytes   # double-buffered x+w per 128 K cols
    k_units_budget = max(1, (_VMEM_TILE_BUDGET - fixed) // per_k_unit)
    kp_min = _round_up(cin, _LANE)
    if kp_min // _LANE <= k_units_budget:
        tk, kp = kp_min, kp_min
    else:
        tk, kp = _choose_tile(cin, _LANE, k_units_budget * _LANE)

    # ---- Pad/cast operands (usually a no-op thanks to the tile choice). ----
    xb = x.astype(compute_dtype)
    wb = w.astype(compute_dtype)
    if (mp, kp) != (n, cin):
        xb = jnp.pad(xb, ((0, mp - n), (0, kp - cin)))
    if (kp, np_) != (cin, cout):
        wb = jnp.pad(wb, ((0, kp - cin), (0, np_ - cout)))
    b2d = b.reshape(1, cout).astype(jnp.float32)
    if np_ != cout:
        b2d = jnp.pad(b2d, ((0, 0), (0, np_ - cout)))

    gm, gn, gk = mp // tm, np_ // tn, kp // tk

    cost = pl.CostEstimate(
        flops=2 * mp * kp * np_,
        transcendentals=mp * np_,
        bytes_accessed=(mp * kp + kp * np_) * in_bytes + mp * np_ * out_bytes,
    )

    if gk == 1:
        kernel = _mlp_silu_kernel_single_k
        grid_spec = pltpu.PrefetchScalarGridSpec(
            num_scalar_prefetch=0,
            grid=(gm, gn),
            in_specs=[
                pl.BlockSpec((tm, tk), lambda i, j: (i, 0)),   # x tile
                pl.BlockSpec((tk, tn), lambda i, j: (0, j)),   # w tile
                pl.BlockSpec((1, tn), lambda i, j: (0, j)),    # bias tile
            ],
            out_specs=pl.BlockSpec((tm, tn), lambda i, j: (i, j)),
        )
        semantics = ("parallel", "parallel")
    else:
        kernel = _mlp_silu_kernel_multi_k
        grid_spec = pltpu.PrefetchScalarGridSpec(
            num_scalar_prefetch=0,
            grid=(gm, gn, gk),
            in_specs=[
                pl.BlockSpec((tm, tk), lambda i, j, k: (i, k)),  # x tile
                pl.BlockSpec((tk, tn), lambda i, j, k: (k, j)),  # w tile (streamed)
                pl.BlockSpec((1, tn), lambda i, j, k: (0, j)),   # bias tile
            ],
            out_specs=pl.BlockSpec((tm, tn), lambda i, j, k: (i, j)),
            scratch_shapes=[pltpu.VMEM((tm, tn), jnp.float32)],  # f32 accumulator
        )
        semantics = ("parallel", "parallel", "arbitrary")

    out = pl.pallas_call(
        kernel,
        out_shape=jax.ShapeDtypeStruct((mp, np_), out_dtype),
        grid_spec=grid_spec,
        compiler_params=pltpu.CompilerParams(
            dimension_semantics=semantics,
            vmem_limit_bytes=_VMEM_LIMIT_BYTES,
        ),
        cost_estimate=cost,
    )(xb, wb, b2d)

    if (mp, np_) != (n, cout):
        out = out[:n, :cout]
    return out


def _ref_mlp(x, w, b):
    y = jnp.dot(x, w, precision=jax.lax.Precision.HIGHEST) + b
    return y * jax.nn.sigmoid(y)


if __name__ == "__main__":
    key = jax.random.PRNGKey(0)
    k_x, k_w, k_b, k_x2, k_w2, k_b2 = jax.random.split(key, 6)

    # --- Small shape consistent with the module: Linear(32 -> 32) + SiLU, batch 8. ---
    batch, cin, cout = 8, 32, 32
    bound = 1.0 / math.sqrt(cin)
    w = jax.random.uniform(k_w, (cin, cout), jnp.float32, minval=-bound, maxval=bound)
    b = jax.random.uniform(k_b, (cout,), jnp.float32, minval=-bound, maxval=bound)
    x = jax.random.normal(k_x, (batch, cin), jnp.float32)
    ref = _ref_mlp(x, w, b)

    out = jax.block_until_ready(mlp_layer(x, w, b))                       # bf16 MXU path
    assert out.shape == (batch, cout)
    assert jnp.allclose(out, ref, atol=2e-2, rtol=2e-2)

    out_f32 = jax.block_until_ready(mlp_layer(x, w, b, compute_dtype=jnp.float32))
    assert jnp.allclose(out_f32, ref, atol=1e-4, rtol=1e-4)

    # --- Larger, unaligned shape: exercises padding-free tiles + K-collapse path. ---
    batch2, cin2, cout2 = 272, 640, 384
    bound2 = 1.0 / math.sqrt(cin2)
    w2 = jax.random.uniform(k_w2, (cin2, cout2), jnp.float32, minval=-bound2, maxval=bound2)
    b2 = jax.random.uniform(k_b2, (cout2,), jnp.float32, minval=-bound2, maxval=bound2)
    x2 = jax.random.normal(k_x2, (batch2, cin2), jnp.float32)
    ref2 = _ref_mlp(x2, w2, b2)

    out2 = jax.block_until_ready(mlp_layer(x2, w2, b2))                   # bf16 default
    assert out2.shape == (batch2, cout2)
    assert jnp.allclose(out2, ref2, atol=5e-2, rtol=5e-2)

    out2_f32 = jax.block_until_ready(mlp_layer(x2, w2, b2, compute_dtype=jnp.float32))
    assert jnp.allclose(out2_f32, ref2, atol=2e-3, rtol=2e-3)

    print("KERNEL_OK")
</pallas_src>

<mosaic_0001>
module attributes {stable_mosaic.version = 11 : i64} {
  func.func @_mlp_silu_kernel_single_k(%arg0: i32, %arg1: i32, %arg2: memref<16x128xbf16, #tpu.memory_space<vmem>>, %arg3: memref<128x128xbf16, #tpu.memory_space<vmem>>, %arg4: memref<1x128xf32, #tpu.memory_space<vmem>>, %arg5: memref<16x128xf32, #tpu.memory_space<vmem>>) attributes {dimension_semantics = [#tpu.dimension_semantics<parallel>, #tpu.dimension_semantics<parallel>], iteration_bounds = array<i64: 1, 1>, scalar_prefetch = 0 : i64, scratch_operands = 0 : i64, tpu.core_type = #tpu.core_type<tc>, window_params = [{transform_indices = @transform_0, window_bounds = array<i64: 16, 128>}, {transform_indices = @transform_1, window_bounds = array<i64: 128, 128>}, {transform_indices = @transform_2, window_bounds = array<i64: 1, 128>}, {transform_indices = @transform_3, window_bounds = array<i64: 16, 128>}]} {
    %c0 = arith.constant 0 : index
    %c0_0 = arith.constant 0 : index
    %0 = vector.load %arg2[%c0, %c0_0] : memref<16x128xbf16, #tpu.memory_space<vmem>>, vector<16x128xbf16>
    %c0_1 = arith.constant 0 : index
    %c0_2 = arith.constant 0 : index
    %1 = vector.load %arg3[%c0_1, %c0_2] : memref<128x128xbf16, #tpu.memory_space<vmem>>, vector<128x128xbf16>
    %cst = arith.constant dense<0.000000e+00> : vector<16x128xf32>
    %2 = tpu.matmul %0, %1, %cst {dimension_numbers = #tpu.dot_dimension_numbers<[1], [0], [0], [1], [0, 0, 1, 1], [], []>} : vector<16x128xbf16>, vector<128x128xbf16>, vector<16x128xf32> -> vector<16x128xf32>
    %c0_3 = arith.constant 0 : index
    %c0_4 = arith.constant 0 : index
    %3 = vector.load %arg4[%c0_3, %c0_4] : memref<1x128xf32, #tpu.memory_space<vmem>>, vector<1x128xf32>
    %4 = vector.broadcast %3 : vector<1x128xf32> to vector<16x128xf32>
    %5 = arith.addf %2, %4 : vector<16x128xf32>
    %6 = arith.negf %5 : vector<16x128xf32>
    %7 = math.exp %6 : vector<16x128xf32>
    %cst_5 = arith.constant 1.000000e+00 : f32
    %8 = vector.broadcast %cst_5 : f32 to vector<16x128xf32>
    %9 = arith.addf %8, %7 : vector<16x128xf32>
    %10 = arith.divf %8, %9 : vector<16x128xf32>
    %11 = arith.mulf %5, %10 : vector<16x128xf32>
    %c0_6 = arith.constant 0 : index
    %c0_7 = arith.constant 0 : index
    %12 = vector.load %arg5[%c0_6, %c0_7] : memref<16x128xf32, #tpu.memory_space<vmem>>, vector<16x128xf32>
    tpu.vector_store %arg5[%c0_6, %c0_7], %11 {strides = array<i32>} : memref<16x128xf32, #tpu.memory_space<vmem>>, vector<16x128xf32>,
    return
  }
  func.func @transform_0(%arg0: i32, %arg1: i32) -> (i32, i32) {
    %c0_i32 = arith.constant 0 : i32
    %c0_i32_0 = arith.constant 0 : i32
    return %arg0, %c0_i32 : i32, i32
  }
  func.func @transform_1(%arg0: i32, %arg1: i32) -> (i32, i32) {
    %c0_i32 = arith.constant 0 : i32
    %c0_i32_0 = arith.constant 0 : i32
    return %c0_i32, %arg1 : i32, i32
  }
  func.func @transform_2(%arg0: i32, %arg1: i32) -> (i32, i32) {
    %c0_i32 = arith.constant 0 : i32
    %c0_i32_0 = arith.constant 0 : i32
    return %c0_i32, %arg1 : i32, i32
  }
  func.func @transform_3(%arg0: i32, %arg1: i32) -> (i32, i32) {
    %c0_i32 = arith.constant 0 : i32
    return %arg0, %arg1 : i32, i32
  }
}

</mosaic_0001>

<bundles_post_ra>
// kernel: tpu_custom_call.1
= control target key start
LH: loop header
LB: loop body
LE: loop exit
PB: predicated region body
PF: predicated region fallthrough
CT: control target
= control target key end

     0   :  { %8 = vsyncpa [#allocation3], 0  ;;  %s405_s0 = inlined_call_operand.hbm [shape: bf16[16,128], index: 0, kind: input, shape index: {}]   ;;  %s406_s1 = inlined_call_operand.hbm [shape: bf16[128,128], index: 1, kind: input, shape index: {}]   ;;  %s407_s2 = inlined_call_operand.vmem [shape: f32[1,128], index: 2, kind: input, shape index: {}]   ;;  %s408_s3 = inlined_call_operand.hbm [shape: f32[16,128], index: 3, kind: output, shape index: {}]  }
   0x1   :  { %9 = vsyncpa [#allocation6], 0 }
   0x2   :  { %10 = vsyncpa [#allocation4], 0  ;;  %s337_s12 = smov [#allocation2]   ;;  %s265_s16 = scalar_lea.hbm %s405_s0, 128 }
   0x3   :  { %s16_s13 = sshll.u32 %s337_s12, 4  ;;  %p266_p0 = scmp.ne.s32.totalorder %s405_s0, %s265_s16  ;;  %s17_s13 = int_to_ptr.vmem [resolvable:$true] %s16_s13 }
   0x4   :  { %p269_p1 = scmp.lt.u32.totalorder %s265_s16, %s405_s0 }
   0x6   :  { %p271_p2 = pnand %p269_p1, %p266_p0 }
   0x8   :  { %274 = shalt.err (!%p271_p2)
}
   0x9   :  { %s275_s21 = scalar_lea.vmem %s17_s13, 128  ;;  %p280_p4 = scmp.lt.s32.totalorder %s17_s13, %s17_s13 }
   0xa   :  { %p276_p3 = scmp.ne.s32.totalorder %s17_s13, %s275_s21  ;;  %p281_p5 = scmp.lt.s32.totalorder %s275_s21, %s275_s21 }
   0xc   :  { %p282_p6 = por %p281_p5, %p280_p4 }
   0xe   :  { %p283_p7 = pnand %p282_p6, %p276_p3 }
  0x10   :  { %286 = shalt.err (!%p283_p7)
}
  0x11   :  { %s338_s22 = smov 64   ;;  %s339_s23 = smov 4  }
  0x12   :  { %22 = dma.hbm_to_vmem [thread:$0]  %s405_s0, 128, %s17_s13, [#allocation3], %s338_s22, %s338_s22, %s339_s23  }
  0x13   :  { %s340_s26 = smov [#allocation5]   ;;  %s287_s30 = scalar_lea.hbm %s406_s1, 1024 }
  0x14   :  { %s28_s27 = sshll.u32 %s340_s26, 4  ;;  %p288_p8 = scmp.ne.s32.totalorder %s406_s1, %s287_s30  ;;  %s29_s27 = int_to_ptr.vmem [resolvable:$true] %s28_s27 }
  0x15   :  { %p291_p9 = scmp.lt.u32.totalorder %s287_s30, %s406_s1 }
  0x17   :  { %p293_p10 = pnand %p291_p9, %p288_p8 }
  0x19   :  { %296 = shalt.err (!%p293_p10)
}
  0x1a   :  { %s297_s8 = scalar_lea.vmem %s29_s27, 1024  ;;  %p302_p12 = scmp.lt.s32.totalorder %s29_s27, %s29_s27 }
  0x1b   :  { %p298_p11 = scmp.ne.s32.totalorder %s29_s27, %s297_s8  ;;  %p303_p13 = scmp.lt.s32.totalorder %s297_s8, %s297_s8 }
  0x1d   :  { %p304_p0 = por %p303_p13, %p302_p12 }
  0x1f   :  { %p305_p1 = pnand %p304_p0, %p298_p11 }
  0x21   :  { %308 = shalt.err (!%p305_p1)
}
  0x22   :  { %34 = dma.hbm_to_vmem [thread:$0]  %s406_s1, 1024, %s29_s27, [#allocation6], %s338_s22, %s338_s22, %s339_s23  }
  0x23   :  { %331 = dma.done.wait [#allocation3], 128  }
  0x24   :  { %332 = vsyncadd [#allocation3], 4294967168 }
  0x25   :  { %333 = dma.done.wait [#allocation6], 1024  }
  0x26   :  { %334 = vsyncadd [#allocation6], 4294966272  ;;  %v341_v0 = vmov 0.0   ;;  %vm342_vm0 = vmmov 0   ;;  %v248_v1 = vld [vmem:[#allocation5] sm:$0xff]   ;;  %v249_v2 = vld [vmem:[#allocation5 + $0x8] sm:$0xff]  }
  0x27   :  { %219 = vmatprep.subr.bf16.mxu0 %v341_v0  ;;  %235 = vmatprep.mubr.msk.bf16.mxu0 %vm342_vm0, %v341_v0  ;;  %v250_v3 = vld [vmem:[#allocation5 + $0x10] sm:$0xff]   ;;  %v251_v4 = vld [vmem:[#allocation5 + $0x18] sm:$0xff]   ;;  %v252_v5 = vld [vmem:[#allocation5 + $0x20] sm:$0xff]   ;;  %s343_s11 = smov [#allocation7]  }
  0x28   :  { %220 = vmatpush3.bf16.msra.mxu0 %v248_v1  ;;  %v253_v6 = vld [vmem:[#allocation5 + $0x28] sm:$0xff]   ;;  %v254_v7 = vld [vmem:[#allocation5 + $0x30] sm:$0xff]   ;;  %v255_v8 = vld [vmem:[#allocation5 + $0x38] sm:$0xff]   ;;  %s185_s12 = sshll.u32 %s343_s11, 4  ;;  %s186_s12 = int_to_ptr.vmem [resolvable:$true] %s185_s12 }
  0x29   :  { %221 = vmatprep.subr.bf16.mxu0 %v341_v0  ;;  %v256_v9 = vld [vmem:[#allocation2] sm:$0xff]   ;;  %p314_p3 = scmp.lt.s32.totalorder %s186_s12, %s186_s12 }
  0x2a   :  { %v198_v10 = vld [vmem:[%s407_s2] ss:$0 sm:$0xff]  ;;  %s309_s2 = scalar_lea.vmem %s186_s12, 256 }
  0x2b   :  { %p310_p2 = scmp.ne.s32.totalorder %s186_s12, %s309_s2  ;;  %p315_p4 = scmp.lt.s32.totalorder %s309_s2, %s309_s2 }
  0x2c   :  { %222 = vmatpush3.bf16.msra.mxu0 %v249_v2 }
  0x2d   :  { %223 = vmatprep.subr.bf16.mxu0 %v341_v0  ;;  %p316_p5 = por %p315_p4, %p314_p3 }
  0x2f   :  { %p317_p6 = pnand %p316_p5, %p310_p2 }
  0x30   :  { %224 = vmatpush3.bf16.msra.mxu0 %v250_v3 }
  0x31   :  { %225 = vmatprep.subr.bf16.mxu0 %v341_v0 }
  0x34   :  { %226 = vmatpush3.bf16.msra.mxu0 %v251_v4 }
  0x35   :  { %227 = vmatprep.subr.bf16.mxu0 %v341_v0 }
  0x38   :  { %228 = vmatpush3.bf16.msra.mxu0 %v252_v5 }
  0x39   :  { %229 = vmatprep.subr.bf16.mxu0 %v341_v0 }
  0x3c   :  { %230 = vmatpush3.bf16.msra.mxu0 %v253_v6 }
  0x3d   :  { %231 = vmatprep.subr.bf16.mxu0 %v341_v0 }
  0x40   :  { %232 = vmatpush3.bf16.msra.mxu0 %v254_v7 }
  0x41   :  { %233 = vmatprep.subr.bf16.mxu0 %v341_v0 }
  0x44   :  { %234 = vmatpush3.bf16.msra.mxu0 %v255_v8 }
  0x47   :  { %236 = vmatmul.mubr.bf16.vlgmr.msra.gmra.mrb[0].mxu0 %v256_v9 }
 0x11a   :  { %v157_v11 = vpop.f32.mrb[0].mxu0 }
 0x11b   :  { %v158_v12 = vadd.f32 %v198_v10, %v157_v11  ;;  %v237_v13 = vpop.f32.mrb[1].mxu0 }
 0x11c   :  { %v160_v14 = vpop.f32.mrb[2].mxu0 }
 0x11d   :  { %v208_v15 = vmul.f32 -1.442695, %v158_v12  ;;  %v161_v16 = vadd.f32 %v198_v10, %v160_v14  ;;  %v238_v17 = vpop.f32.mrb[3].mxu0 }
 0x11f   :  { %257 = vpow2.f32 %v208_v15  ;;  %v209_v18 = vmul.f32 -1.442695, %v161_v16 }
 0x121   :  { %259 = vpow2.f32 %v209_v18 }
 0x129   :  { %v258_v19 = vpop.eup %257 }
 0x12a   :  { %v170_v20 = vadd.f32 1.0, %v258_v19 }
 0x12b   :  { %v260_v21 = vpop.eup %259 }
 0x12c   :  { %261 = vrcp.f32 %v170_v20  ;;  %v171_v22 = vadd.f32 1.0, %v260_v21 }
 0x12e   :  { %263 = vrcp.f32 %v171_v22 }
 0x136   :  { %v262_v23 = vpop.eup %261 }
 0x137   :  { %v176_v24 = vmul.f32 %v262_v23, %v158_v12 }
 0x138   :  { %v264_v25 = vpop.eup %263 }
 0x139   :  { %178 = vst [vmem:[#allocation7] sm:$0xff] %v176_v24  ;;  %v177_v26 = vmul.f32 %v264_v25, %v161_v16 }
 0x13b   :  { %179 = vst [vmem:[#allocation7 + $0x8] sm:$0xff] %v177_v26 }
 0x13c   :  { %320 = shalt.err (!%p317_p6)
}
 0x13d   :  { %s321_s15 = scalar_lea.hbm %s408_s3, 256 }
 0x13e   :  { %p322_p7 = scmp.ne.s32.totalorder %s408_s3, %s321_s15  ;;  %p325_p8 = scmp.lt.u32.totalorder %s321_s15, %s408_s3 }
 0x140   :  { %p327_p9 = pnand %p325_p8, %p322_p7 }
 0x142   :  { %330 = shalt.err (!%p327_p9)
}
 0x143   :  { %s344_s20 = smov 128   ;;  %s345_s21 = smov 8  }
 0x144   :  { %191 = dma.vmem_to_hbm [thread:$0]  %s186_s12, 256, %s408_s3, [#allocation4], %s344_s20, %s344_s20, %s345_s21  }
 0x145   :  { %335 = dma.done.wait [#allocation4], 256  }
 0x146   :  { %336 = vsyncadd [#allocation4], 4294967040 }
 0x147   :  { %195 = vsyncpa [#allocation3], 1 }
 0x148   :  { %196 = vsyncpa [#allocation6], 1 }
 0x149   :  { %197 = vsyncpa [#allocation4], 1 }

</bundles_post_ra>
